<compile_context>
chip_gen: v5e
topology: v5e:2x2
jax: 0.10.0
libtpu: 0.0.40
codegen_flags: <defaults>
</compile_context>

<pallas_src>
import jax
import jax.numpy as jnp
from jax.experimental import pallas as pl
from jax.experimental.pallas import tpu as pltpu

LANE = 128      # TPU lane width: every feature dim is zero-padded to this
SUBLANE = 8


def _round_up(x, m):
    return (x + m - 1) // m * m


def _hier_pv_kernel(feat_ref, zone_ref, w_ref, aux_ref, out_ref):
    """Fused forward for one batch tile.

    feat_ref : (TB, LANE)          bf16  observation features (zero-padded)
    zone_ref : (TB*S_pad, LANE)    bf16  zone_obs, rows grouped S_pad-per-batch-row
    w_ref    : (4, LANE, LANE)     bf16  [Wenv | Wa1_emb | Wa1_zone | Wc1], (in, out) layout
    aux_ref  : (SUBLANE, LANE)     f32   rows: benv, ba1, bc1, wa2, wc2, head-bias-row, 0, 0
    out_ref  : (TB, LANE)          f32   cols [0:S_pad) = actor logits, col S_pad = value
    """
    f32 = jnp.float32
    tb = feat_ref.shape[0]
    s_pad = zone_ref.shape[0] // tb
    h_pad = w_ref.shape[-1]
    out_w = out_ref.shape[-1]

    aux = aux_ref[...]                      # (8, LANE) f32 — one vreg
    benv, ba1, bc1 = aux[0:1, :], aux[1:2, :], aux[2:3, :]
    wa2, wc2 = aux[3:4, :], aux[4:5, :]     # head weight rows (H -> 1), kept in f32
    head_bias = aux[5:6, :]                 # [ba2]*S_pad ++ [bc2] ++ zeros

    # env model: embedding = relu(feat @ Wenv + benv)                       (TB, E_pad)
    emb = jnp.maximum(
        jnp.dot(feat_ref[...], w_ref[0], preferred_element_type=f32) + benv, 0.0)
    emb_bf = emb.astype(jnp.bfloat16)       # bf16 MXU operands, f32 accumulation

    # actor layer 1:  cat([emb_rep, zone]) @ Wa1  ==  emb @ Wa1e  +  zone @ Wa1z
    a_emb = jnp.dot(emb_bf, w_ref[1], preferred_element_type=f32)           # (TB, H)
    a_zone = jnp.dot(zone_ref[...], w_ref[2], preferred_element_type=f32)   # (TB*S, H)
    a_zone = a_zone.reshape(tb, s_pad, h_pad)                               # (TB, S, H)
    # per-skill repetition of the embedding term is a pure broadcast (no rep matmul)
    a_h = jnp.maximum(a_emb[:, None, :] + a_zone + ba1, 0.0)                # (TB, S, H)

    # actor head (H -> 1): VPU multiply + lane reduction instead of an N=1 MXU matmul
    logits = jnp.sum(a_h * wa2, axis=-1)                                    # (TB, S_pad)

    # critic: Linear -> ReLU -> (H -> 1) head
    c_h = jnp.maximum(
        jnp.dot(emb_bf, w_ref[3], preferred_element_type=f32) + bc1, 0.0)   # (TB, H)
    value = jnp.sum(c_h * wc2, axis=-1, keepdims=True)                      # (TB, 1)

    # lane-dense output slab: one unmasked (TB, LANE) store.
    # Only columns [0:S) and column S_pad are consumed by the wrapper.
    value_b = jnp.broadcast_to(value, (tb, out_w - s_pad))
    out_ref[...] = jnp.concatenate([logits, value_b], axis=-1) + head_bias


def hier_policy_value_forward(features, zone_obs, packed):
    """features: (B, F) f32; zone_obs: (B, S, Z) f32.
    Returns (logits (B, S), value (B,)) — logits parameterize the Categorical dist."""
    B, F = features.shape
    _, S, Z = zone_obs.shape
    s_pad = packed["s_pad"]
    assert F <= LANE and Z <= LANE and S <= s_pad

    bf16 = jnp.bfloat16
    tile_b = min(256, _round_up(B, 16))          # multiple of 16 -> valid bf16 sublane tile
    b_pad = _round_up(B, tile_b)
    grid = (b_pad // tile_b,)

    feat_p = jnp.zeros((b_pad, LANE), bf16).at[:B, :F].set(features.astype(bf16))
    zone_p = (jnp.zeros((b_pad, s_pad, LANE), bf16)
              .at[:B, :S, :Z].set(zone_obs.astype(bf16))
              .reshape(b_pad * s_pad, LANE))     # rows grouped s_pad-per-batch-row

    flops = 2 * b_pad * LANE * LANE * (3 + s_pad)
    bytes_accessed = ((feat_p.size + zone_p.size + packed["w"].size) * 2
                      + packed["aux"].size * 4 + b_pad * LANE * 4)

    out = pl.pallas_call(
        _hier_pv_kernel,
        out_shape=jax.ShapeDtypeStruct((b_pad, LANE), jnp.float32),
        grid=grid,
        in_specs=[
            pl.BlockSpec((tile_b, LANE), lambda i: (i, 0)),
            pl.BlockSpec((tile_b * s_pad, LANE), lambda i: (i, 0)),
            pl.BlockSpec((4, LANE, LANE), lambda i: (0, 0, 0)),   # weights stay resident
            pl.BlockSpec((SUBLANE, LANE), lambda i: (0, 0)),      # bias/head slab resident
        ],
        out_specs=pl.BlockSpec((tile_b, LANE), lambda i: (i, 0)),
        compiler_params=pltpu.CompilerParams(
            dimension_semantics=("parallel",),          # megacore-shardable batch axis
            vmem_limit_bytes=32 * 1024 * 1024,
        ),
        cost_estimate=pl.CostEstimate(flops=flops, transcendentals=0,
                                      bytes_accessed=bytes_accessed),
    )(feat_p, zone_p, packed["w"], packed["aux"])

    logits = out[:B, :S]          # actor(...).squeeze(-1)
    value = out[:B, s_pad]        # critic(...).squeeze(1)
    return logits, value


# ----------------------------- parameters ------------------------------------


def _torch_linear_init(key, out_dim, in_dim):
    """init_params: weight ~ N(0,1), row-L2-normalized; bias = 0. Torch (out, in) layout."""
    w = jax.random.normal(key, (out_dim, in_dim), dtype=jnp.float32)
    w = w / jnp.sqrt(jnp.sum(w * w, axis=1, keepdims=True))
    return w, jnp.zeros((out_dim,), jnp.float32)


def make_params(key, feat_dim, zone_size, n_skills, h_dim):
    """Torch-layout parameters for HighPolicyValueModel (env model assumed Linear+ReLU)."""
    del n_skills  # only used for the n_skills == n_zones assertion in torch
    emb_dim = h_dim
    k_env, k_a1, k_a2, k_c1, k_c2 = jax.random.split(key, 5)
    w_env, b_env = _torch_linear_init(k_env, h_dim, feat_dim)
    w_a1, b_a1 = _torch_linear_init(k_a1, h_dim, emb_dim + zone_size)
    w_a2, b_a2 = _torch_linear_init(k_a2, 1, h_dim)
    w_c1, b_c1 = _torch_linear_init(k_c1, h_dim, emb_dim)
    w_c2, b_c2 = _torch_linear_init(k_c2, 1, h_dim)
    return dict(w_env=w_env, b_env=b_env, w_a1=w_a1, b_a1=b_a1, w_a2=w_a2, b_a2=b_a2,
                w_c1=w_c1, b_c1=b_c1, w_c2=w_c2, b_c2=b_c2, emb_dim=emb_dim)


def pack_params(p, n_skills):
    """Pack every weight/bias into two lane-padded slabs (2 DMAs instead of ~14)."""
    emb_dim = p["emb_dim"]
    s_pad = max(SUBLANE, _round_up(n_skills, SUBLANE))

    def pad_wT(w):   # torch (out, in) -> padded (LANE_in, LANE_out) "x @ W" layout
        out_d, in_d = w.shape
        return jnp.zeros((LANE, LANE), jnp.float32).at[:in_d, :out_d].set(w.T)

    w_a1e = p["w_a1"][:, :emb_dim]
    w_a1z = p["w_a1"][:, emb_dim:]
    w_slab = jnp.stack([pad_wT(p["w_env"]), pad_wT(w_a1e),
                        pad_wT(w_a1z), pad_wT(p["w_c1"])]).astype(jnp.bfloat16)

    def pad_row(v):
        return jnp.zeros((LANE,), jnp.float32).at[:v.shape[0]].set(v)

    head_bias = (jnp.zeros((LANE,), jnp.float32)
                 .at[:s_pad].set(p["b_a2"][0])       # actor head bias under the logits
                 .at[s_pad].set(p["b_c2"][0]))       # critic head bias under the value
    zeros = jnp.zeros((LANE,), jnp.float32)
    aux = jnp.stack([pad_row(p["b_env"]), pad_row(p["b_a1"]), pad_row(p["b_c1"]),
                     pad_row(p["w_a2"][0]), pad_row(p["w_c2"][0]),
                     head_bias, zeros, zeros])
    return {"w": w_slab, "aux": aux, "s_pad": s_pad}


# ----------------------------- reference & test -------------------------------


def _reference_forward(features, zone_obs, p):
    """Pure-JAX reference reproducing the torch forward (concat form), using the same
    bf16-operand / f32-accumulate matmul precision the kernel feeds the MXU."""
    bf16 = jnp.bfloat16

    def mm(x, w):  # x (..., in) @ torch-layout w (out, in)
        return jnp.dot(x.astype(bf16), w.T.astype(bf16),
                       preferred_element_type=jnp.float32)

    emb = jax.nn.relu(mm(features, p["w_env"]) + p["b_env"])                # (B, E)
    B, E = emb.shape
    S = zone_obs.shape[1]
    emb_rep = jnp.broadcast_to(emb[:, None, :], (B, S, E))
    x = jnp.concatenate([emb_rep, zone_obs], axis=-1)                       # (B, S, E+Z)
    a_h = jax.nn.relu(mm(x, p["w_a1"]) + p["b_a1"])
    logits = jnp.einsum("bsh,h->bs", a_h, p["w_a2"][0]) + p["b_a2"][0]      # (B, S)
    c_h = jax.nn.relu(mm(emb, p["w_c1"]) + p["b_c1"])
    value = c_h @ p["w_c2"][0] + p["b_c2"][0]                               # (B,)
    return logits, value


if __name__ == "__main__":
    # Small shapes consistent with the module: obs_space['zone_obs'] = (n_skills, zone_size)
    B, n_skills, zone_size = 2, 4, 8
    feat_dim, h_dim = 16, 32

    key = jax.random.PRNGKey(0)
    k_feat, k_zone, k_params = jax.random.split(key, 3)
    features = jax.random.normal(k_feat, (B, feat_dim), dtype=jnp.float32)
    zone_obs = jax.random.normal(k_zone, (B, n_skills, zone_size), dtype=jnp.float32)

    params = make_params(k_params, feat_dim, zone_size, n_skills, h_dim)
    packed = pack_params(params, n_skills)

    logits, value = hier_policy_value_forward(features, zone_obs, packed)
    jax.block_until_ready((logits, value))

    # Categorical(logits=logits) equivalent (glue, not part of the kernel):
    probs = jax.nn.softmax(logits, axis=-1)

    ref_logits, ref_value = _reference_forward(features, zone_obs, params)
    assert logits.shape == (B, n_skills) and value.shape == (B,)
    assert jnp.allclose(logits, ref_logits, atol=2e-3, rtol=2e-3)
    assert jnp.allclose(value, ref_value, atol=2e-3, rtol=2e-3)
    assert jnp.allclose(probs.sum(-1), 1.0, atol=1e-5)

    print("KERNEL_OK")
</pallas_src>

<mosaic_0001>
module attributes {stable_mosaic.version = 11 : i64} {
  func.func @_hier_pv_kernel(%arg0: i32, %arg1: memref<16x128xbf16, #tpu.memory_space<vmem>>, %arg2: memref<128x128xbf16, #tpu.memory_space<vmem>>, %arg3: memref<4x128x128xbf16, #tpu.memory_space<vmem>>, %arg4: memref<8x128xf32, #tpu.memory_space<vmem>>, %arg5: memref<16x128xf32, #tpu.memory_space<vmem>>) attributes {dimension_semantics = [#tpu.dimension_semantics<parallel>], iteration_bounds = array<i64: 1>, scalar_prefetch = 0 : i64, scratch_operands = 0 : i64, tpu.core_type = #tpu.core_type<tc>, window_params = [{transform_indices = @transform_0, window_bounds = array<i64: 16, 128>}, {transform_indices = @transform_1, window_bounds = array<i64: 128, 128>}, {pipeline_mode = #tpu.pipeline_mode<synchronous>, transform_indices = @transform_2, window_bounds = array<i64: 4, 128, 128>}, {pipeline_mode = #tpu.pipeline_mode<synchronous>, transform_indices = @transform_3, window_bounds = array<i64: 8, 128>}, {transform_indices = @transform_4, window_bounds = array<i64: 16, 128>}]} {
    %c0 = arith.constant 0 : index
    %c0_0 = arith.constant 0 : index
    %0 = vector.load %arg4[%c0, %c0_0] : memref<8x128xf32, #tpu.memory_space<vmem>>, vector<8x128xf32>
    %1 = vector.extract_strided_slice %0 {offsets = [0, 0], sizes = [1, 128], strides = [1, 1]} : vector<8x128xf32> to vector<1x128xf32>
    %2 = vector.extract_strided_slice %0 {offsets = [1, 0], sizes = [1, 128], strides = [1, 1]} : vector<8x128xf32> to vector<1x128xf32>
    %3 = vector.extract_strided_slice %0 {offsets = [2, 0], sizes = [1, 128], strides = [1, 1]} : vector<8x128xf32> to vector<1x128xf32>
    %4 = vector.extract_strided_slice %0 {offsets = [3, 0], sizes = [1, 128], strides = [1, 1]} : vector<8x128xf32> to vector<1x128xf32>
    %5 = vector.extract_strided_slice %0 {offsets = [4, 0], sizes = [1, 128], strides = [1, 1]} : vector<8x128xf32> to vector<1x128xf32>
    %6 = vector.extract_strided_slice %0 {offsets = [5, 0], sizes = [1, 128], strides = [1, 1]} : vector<8x128xf32> to vector<1x128xf32>
    %c0_1 = arith.constant 0 : index
    %c0_2 = arith.constant 0 : index
    %7 = vector.load %arg1[%c0_1, %c0_2] : memref<16x128xbf16, #tpu.memory_space<vmem>>, vector<16x128xbf16>
    %c0_3 = arith.constant 0 : index
    %c0_4 = arith.constant 0 : index
    %c0_5 = arith.constant 0 : index
    %8 = vector.load %arg3[%c0_3, %c0_4, %c0_5] : memref<4x128x128xbf16, #tpu.memory_space<vmem>>, vector<1x128x128xbf16>
    %9 = vector.shape_cast %8 : vector<1x128x128xbf16> to vector<128x128xbf16>
    %cst = arith.constant dense<0.000000e+00> : vector<16x128xf32>
    %10 = tpu.matmul %7, %9, %cst {dimension_numbers = #tpu.dot_dimension_numbers<[1], [0], [0], [1], [0, 0, 1, 1], [], []>} : vector<16x128xbf16>, vector<128x128xbf16>, vector<16x128xf32> -> vector<16x128xf32>
    %11 = vector.broadcast %1 : vector<1x128xf32> to vector<16x128xf32>
    %12 = arith.addf %10, %11 : vector<16x128xf32>
    %cst_6 = arith.constant 0.000000e+00 : f32
    %13 = vector.broadcast %cst_6 : f32 to vector<16x128xf32>
    %14 = arith.maximumf %12, %13 : vector<16x128xf32>
    %15 = arith.truncf %14 : vector<16x128xf32> to vector<16x128xbf16>
    %c1 = arith.constant 1 : index
    %c0_7 = arith.constant 0 : index
    %c0_8 = arith.constant 0 : index
    %16 = vector.load %arg3[%c1, %c0_7, %c0_8] : memref<4x128x128xbf16, #tpu.memory_space<vmem>>, vector<1x128x128xbf16>
    %17 = vector.shape_cast %16 : vector<1x128x128xbf16> to vector<128x128xbf16>
    %cst_9 = arith.constant dense<0.000000e+00> : vector<16x128xf32>
    %18 = tpu.matmul %15, %17, %cst_9 {dimension_numbers = #tpu.dot_dimension_numbers<[1], [0], [0], [1], [0, 0, 1, 1], [], []>} : vector<16x128xbf16>, vector<128x128xbf16>, vector<16x128xf32> -> vector<16x128xf32>
    %c0_10 = arith.constant 0 : index
    %c0_11 = arith.constant 0 : index
    %19 = vector.load %arg2[%c0_10, %c0_11] : memref<128x128xbf16, #tpu.memory_space<vmem>>, vector<128x128xbf16>
    %c2 = arith.constant 2 : index
    %c0_12 = arith.constant 0 : index
    %c0_13 = arith.constant 0 : index
    %20 = vector.load %arg3[%c2, %c0_12, %c0_13] : memref<4x128x128xbf16, #tpu.memory_space<vmem>>, vector<1x128x128xbf16>
    %21 = vector.shape_cast %20 : vector<1x128x128xbf16> to vector<128x128xbf16>
    %cst_14 = arith.constant dense<0.000000e+00> : vector<128x128xf32>
    %22 = tpu.matmul %19, %21, %cst_14 {dimension_numbers = #tpu.dot_dimension_numbers<[1], [0], [0], [1], [0, 0, 1, 1], [], []>} : vector<128x128xbf16>, vector<128x128xbf16>, vector<128x128xf32> -> vector<128x128xf32>
    %23 = vector.shape_cast %22 : vector<128x128xf32> to vector<16x8x128xf32>
    %24 = vector.shape_cast %18 : vector<16x128xf32> to vector<16x1x128xf32>
    %25 = vector.broadcast %24 : vector<16x1x128xf32> to vector<16x8x128xf32>
    %26 = arith.addf %25, %23 : vector<16x8x128xf32>
    %27 = vector.shape_cast %2 : vector<1x128xf32> to vector<1x1x128xf32>
    %28 = vector.broadcast %27 : vector<1x1x128xf32> to vector<16x8x128xf32>
    %29 = arith.addf %26, %28 : vector<16x8x128xf32>
    %cst_15 = arith.constant 0.000000e+00 : f32
    %30 = vector.broadcast %cst_15 : f32 to vector<16x8x128xf32>
    %31 = arith.maximumf %29, %30 : vector<16x8x128xf32>
    %32 = vector.shape_cast %4 : vector<1x128xf32> to vector<1x1x128xf32>
    %33 = vector.broadcast %32 : vector<1x1x128xf32> to vector<16x8x128xf32>
    %34 = arith.mulf %31, %33 : vector<16x8x128xf32>
    %cst_16 = arith.constant dense<0.000000e+00> : vector<16x8xf32>
    %35 = vector.multi_reduction <add>, %34, %cst_16 [2] : vector<16x8x128xf32> to vector<16x8xf32>
    %c3 = arith.constant 3 : index
    %c0_17 = arith.constant 0 : index
    %c0_18 = arith.constant 0 : index
    %36 = vector.load %arg3[%c3, %c0_17, %c0_18] : memref<4x128x128xbf16, #tpu.memory_space<vmem>>, vector<1x128x128xbf16>
    %37 = vector.shape_cast %36 : vector<1x128x128xbf16> to vector<128x128xbf16>
    %cst_19 = arith.constant dense<0.000000e+00> : vector<16x128xf32>
    %38 = tpu.matmul %15, %37, %cst_19 {dimension_numbers = #tpu.dot_dimension_numbers<[1], [0], [0], [1], [0, 0, 1, 1], [], []>} : vector<16x128xbf16>, vector<128x128xbf16>, vector<16x128xf32> -> vector<16x128xf32>
    %39 = vector.broadcast %3 : vector<1x128xf32> to vector<16x128xf32>
    %40 = arith.addf %38, %39 : vector<16x128xf32>
    %cst_20 = arith.constant 0.000000e+00 : f32
    %41 = vector.broadcast %cst_20 : f32 to vector<16x128xf32>
    %42 = arith.maximumf %40, %41 : vector<16x128xf32>
    %43 = vector.broadcast %5 : vector<1x128xf32> to vector<16x128xf32>
    %44 = arith.mulf %42, %43 : vector<16x128xf32>
    %cst_21 = arith.constant dense<0.000000e+00> : vector<16xf32>
    %45 = vector.multi_reduction <add>, %44, %cst_21 [1] : vector<16x128xf32> to vector<16xf32>
    %46 = vector.shape_cast %45 : vector<16xf32> to vector<16x1xf32>
    %47 = vector.shape_cast %46 : vector<16x1xf32> to vector<16x1xf32>
    %48 = vector.broadcast %47 : vector<16x1xf32> to vector<16x120xf32>
    %49 = tpu.concatenate %35, %48 in 1 : vector<16x8xf32>, vector<16x120xf32> -> vector<16x128xf32>
    %50 = vector.broadcast %6 : vector<1x128xf32> to vector<16x128xf32>
    %51 = arith.addf %49, %50 : vector<16x128xf32>
    %c0_22 = arith.constant 0 : index
    %c0_23 = arith.constant 0 : index
    %52 = vector.load %arg5[%c0_22, %c0_23] : memref<16x128xf32, #tpu.memory_space<vmem>>, vector<16x128xf32>
    tpu.vector_store %arg5[%c0_22, %c0_23], %51 {strides = array<i32>} : memref<16x128xf32, #tpu.memory_space<vmem>>, vector<16x128xf32>,
    return
  }
  func.func @transform_0(%arg0: i32) -> (i32, i32) {
    %c0_i32 = arith.constant 0 : i32
    %c0_i32_0 = arith.constant 0 : i32
    return %arg0, %c0_i32 : i32, i32
  }
  func.func @transform_1(%arg0: i32) -> (i32, i32) {
    %c0_i32 = arith.constant 0 : i32
    %c0_i32_0 = arith.constant 0 : i32
    return %arg0, %c0_i32 : i32, i32
  }
  func.func @transform_2(%arg0: i32) -> (i32, i32, i32) {
    %c0_i32 = arith.constant 0 : i32
    %c0_i32_0 = arith.constant 0 : i32
    %c0_i32_1 = arith.constant 0 : i32
    %c0_i32_2 = arith.constant 0 : i32
    return %c0_i32, %c0_i32_0, %c0_i32_1 : i32, i32, i32
  }
  func.func @transform_3(%arg0: i32) -> (i32, i32) {
    %c0_i32 = arith.constant 0 : i32
    %c0_i32_0 = arith.constant 0 : i32
    %c0_i32_1 = arith.constant 0 : i32
    return %c0_i32, %c0_i32_0 : i32, i32
  }
  func.func @transform_4(%arg0: i32) -> (i32, i32) {
    %c0_i32 = arith.constant 0 : i32
    %c0_i32_0 = arith.constant 0 : i32
    return %arg0, %c0_i32 : i32, i32
  }
}

</mosaic_0001>

<bundles_post_ra>
// kernel: tpu_custom_call.1
= control target key start
LH: loop header
LB: loop body
LE: loop exit
PB: predicated region body
PF: predicated region fallthrough
CT: control target
= control target key end

     0   :  { %9 = vsyncpa [#allocation3], 0  ;;  %s1220_s0 = inlined_call_operand.hbm [shape: bf16[16,128], index: 0, kind: input, shape index: {}]   ;;  %s1221_s1 = inlined_call_operand.hbm [shape: bf16[128,128], index: 1, kind: input, shape index: {}]   ;;  %s1222_s2 = inlined_call_operand.hbm [shape: bf16[4,128,128], index: 2, kind: input, shape index: {}]   ;;  %s1223_s3 = inlined_call_operand.hbm [shape: f32[8,128], index: 3, kind: input, shape index: {}]   ;;  %s1224_s4 = inlined_call_operand.hbm [shape: f32[16,128], index: 4, kind: output, shape index: {}]  }
   0x1   :  { %10 = vsyncpa [#allocation6], 0 }
   0x2   :  { %11 = vsyncpa [#allocation9], 0 }
   0x3   :  { %12 = vsyncpa [#allocation4], 0  ;;  %s30_s17 = sshll.u32 %s1221_s1, 4  ;;  %s1106_s18 = smov [#allocation5]   ;;  %s31_s17 = int_to_ptr.hbm [resolvable:$true] %s30_s17 }
   0x4   :  { %s32_s19 = sshll.u32 %s1106_s18, 4  ;;  %s17_s22 = sshll.u32 %s1220_s0, 4  ;;  %s33_s19 = int_to_ptr.vmem [resolvable:$true] %s32_s19  ;;  %s18_s22 = int_to_ptr.hbm [resolvable:$true] %s17_s22 }
   0x5   :  { %s1107_s23 = smov 64   ;;  %s1108_s24 = smov 4  }
   0x6   :  { %38 = dma.hbm_to_vmem [thread:$0]  %s31_s17, 1024, %s33_s19, [#allocation6], %s1107_s23, %s1107_s23, %s1108_s24  }
   0x7   :  { %s1109_s25 = smov [#allocation2]   ;;  %s43_s29 = sshll.u32 %s1222_s2, 4  ;;  %s44_s29 = int_to_ptr.hbm [resolvable:$true] %s43_s29 }
   0x8   :  { %s19_s26 = sshll.u32 %s1109_s25, 4  ;;  %s57_s5 = sshll.u32 %s1223_s3, 4  ;;  %s20_s26 = int_to_ptr.vmem [resolvable:$true] %s19_s26  ;;  %s58_s5 = int_to_ptr.hbm [resolvable:$true] %s57_s5 }
   0x9   :  { %25 = dma.hbm_to_vmem [thread:$0]  %s18_s22, 128, %s20_s26, [#allocation3], %s1107_s23, %s1107_s23, %s1108_s24  }
   0xa   :  { %s1110_s6 = smov [#allocation7]   ;;  %s1111_s0 = smov [#allocation8]  }
   0xb   :  { %s45_s7 = sshll.u32 %s1110_s6, 4  ;;  %s59_s8 = sshll.u32 %s1111_s0, 4  ;;  %s46_s7 = int_to_ptr.vmem [resolvable:$true] %s45_s7  ;;  %s60_s8 = int_to_ptr.vmem [resolvable:$true] %s59_s8 }
   0xc   :  { %51 = dma.hbm_to_vmem [thread:$0]  %s44_s29, 4096, %s46_s7, [#allocation6], %s1107_s23, %s1107_s23, %s1108_s24  }
   0xd   :  { %62 = dma.hbm_to_vmem [thread:$0]  %s58_s5, 128, %s60_s8, [#allocation9]  }
   0xe   :  { %1098 = dma.done.wait [#allocation3], 128  }
   0xf   :  { %1099 = vsyncadd [#allocation3], 4294967168 }
  0x10   :  { %1100 = dma.done.wait [#allocation6], 5120  }
  0x11   :  { %1101 = vsyncadd [#allocation6], 4294962176 }
  0x12   :  { %1102 = dma.done.wait [#allocation9], 128  }
  0x13   :  { %1103 = vsyncadd [#allocation9], 4294967168  ;;  %v920_v0 = vld [vmem:[#allocation7 + $0x38] sm:$0xff]  ;;  %v919_v1 = vld [vmem:[#allocation7 + $0x30] sm:$0xff]  ;;  %vm696_vm0 = vcmask 1041409   ;;  %vm698_vm1 = vcmask 1042434  }
  0x14   :  { %153 = vmatpush.bf16.msra.mxu1 %v920_v0  ;;  %v944_v2 = vld [vmem:[#allocation7 + $0xb8] sm:$0xff]  ;;  %v943_v3 = vld [vmem:[#allocation7 + $0xb0] sm:$0xff]  ;;  %v918_v4 = vld [vmem:[#allocation7 + $0x28] sm:$0xff]  ;;  %vm700_vm2 = vcmask 1043459   ;;  %vm702_vm3 = vcmask 1044484   ;;  %vm704_vm4 = vcmask 1045509  }
  0x15   :  { %378 = vmatpush.bf16.msra.mxu0 %v944_v2  ;;  %953 = vmatpush.bf16.msra.mxu2 %v944_v2  ;;  %v942_v5 = vld [vmem:[#allocation7 + $0xa8] sm:$0xff]  ;;  %v917_v6 = vld [vmem:[#allocation7 + $0x20] sm:$0xff]  ;;  %v916_v8 = vld [vmem:[#allocation7 + $0x18] sm:$0xff]  ;;  %vm706_vm5 = vcmask 1046534   ;;  %vm708_vm6 = vcmask 1047559   ;;  %vm719_vm7 = vcmask 64512  }
  0x16   :  { %954 = vmatpush.bf16.msra.mxu3 %v944_v2  ;;  %v941_v7 = vld [vmem:[#allocation7 + $0xa0] sm:$0xff]  ;;  %v940_v9 = vld [vmem:[#allocation7 + $0x98] sm:$0xff]  ;;  %v915_v10 = vld [vmem:[#allocation7 + $0x10] sm:$0xff]  ;;  %s1112_s2 = smov [#allocation10]   ;;  %s733_s11 = sshll.u32 %s1224_s4, 4  ;;  %s734_s11 = int_to_ptr.hbm [resolvable:$true] %s733_s11 }
  0x17   :  { %v939_v11 = vld [vmem:[#allocation7 + $0x90] sm:$0xff]  ;;  %v914_v12 = vld [vmem:[#allocation7 + $0x8] sm:$0xff]  ;;  %v913_v14 = vld [vmem:[#allocation7] sm:$0xff]  ;;  %s731_s3 = sshll.u32 %s1112_s2, 4  ;;  %s1113_s12 = smov 128   ;;  %s732_s3 = int_to_ptr.vmem [resolvable:$true] %s731_s3 }
  0x18   :  { %154 = vmatpush.bf16.msra.mxu1 %v919_v1  ;;  %v938_v13 = vld [vmem:[#allocation7 + $0x88] sm:$0xff]  ;;  %v928_v15 = vld [vmem:[#allocation7 + $0x78] sm:$0xff]  ;;  %v937_v17 = vld [vmem:[#allocation7 + $0x80] sm:$0xff]  ;;  %s1114_s13 = smov 8  }
  0x19   :  { %379 = vmatpush.bf16.msra.mxu0 %v943_v3  ;;  %955 = vmatpush.bf16.msra.mxu2 %v943_v3  ;;  %v912_v16 = vld [vmem:[#allocation2] sm:$0xff]  ;;  %v927_v19 = vld [vmem:[#allocation7 + $0x70] sm:$0xff]  ;;  %v929_v20 = vld [vmem:[#allocation5] sm:$0xff] }
  0x1a   :  { %956 = vmatpush.bf16.msra.mxu3 %v943_v3  ;;  %v952_v18 = vld [vmem:[#allocation7 + $0xf8] sm:$0xff]  ;;  %v935_v22 = vld [vmem:[#allocation5 + $0x30] sm:$0xff]  ;;  %v926_v24 = vld [vmem:[#allocation7 + $0x68] sm:$0xff] }
  0x1b   :  { %v932_v21 = vld [vmem:[#allocation5 + $0x18] sm:$0xff]  ;;  %v951_v23 = vld [vmem:[#allocation7 + $0xf0] sm:$0xff]  ;;  %v950_v25 = vld [vmem:[#allocation7 + $0xe8] sm:$0xff] }
  0x1c   :  { %155 = vmatpush.bf16.msra.mxu1 %v918_v4  ;;  %v925_v26 = vld [vmem:[#allocation7 + $0x60] sm:$0xff]  ;;  %v930_v28 = vld [vmem:[#allocation5 + $0x8] sm:$0xff]  ;;  %v936_v30 = vld [vmem:[#allocation5 + $0x38] sm:$0xff] }
  0x1d   :  { %380 = vmatpush.bf16.msra.mxu0 %v942_v5  ;;  %957 = vmatpush.bf16.msra.mxu2 %v942_v5  ;;  %v949_v27 = vld [vmem:[#allocation7 + $0xe0] sm:$0xff]  ;;  %v924_v31 = vld [vmem:[#allocation7 + $0x58] sm:$0xff]  ;;  %v923_v33 = vld [vmem:[#allocation7 + $0x50] sm:$0xff] }
  0x1e   :  { %958 = vmatpush.bf16.msra.mxu3 %v942_v5  ;;  %v933_v29 = vld [vmem:[#allocation5 + $0x20] sm:$0xff]  ;;  %v948_v32 = vld [vmem:[#allocation7 + $0xd8] sm:$0xff]  ;;  %v931_v34 = vld [vmem:[#allocation5 + $0x10] sm:$0xff] }
  0x1f   :  { %v947_v35 = vld [vmem:[#allocation7 + $0xd0] sm:$0xff]  ;;  %v922_v36 = vld [vmem:[#allocation7 + $0x48] sm:$0xff]  ;;  %v921_v38 = vld [vmem:[#allocation7 + $0x40] sm:$0xff] }
  0x20   :  { %156 = vmatpush.bf16.msra.mxu1 %v917_v6  ;;  %v946_v37 = vld [vmem:[#allocation7 + $0xc8] sm:$0xff]  ;;  %v945_v39 = vld [vmem:[#allocation7 + $0xc0] sm:$0xff] }
  0x21   :  { %381 = vmatpush.bf16.msra.mxu0 %v941_v7  ;;  %959 = vmatpush.bf16.msra.mxu2 %v941_v7  ;;  %v934_v40 = vld [vmem:[#allocation5 + $0x28] sm:$0xff]  ;;  %v1152_v41 = vld [vmem:[#allocation8] sm:$0xff] }
  0x22   :  { %960 = vmatpush.bf16.msra.mxu3 %v941_v7  ;;  %v98_v43 = vperm.slane %v1152_v41, 0  ;;  %v1160_v59 = vperm.slane %v1152_v41, 1 }
  0x24   :  { %157 = vmatpush.bf16.msra.mxu1 %v916_v8  ;;  %v1165_v8 = vperm.slane %v1152_v41, 3 }
  0x25   :  { %382 = vmatpush.bf16.msra.mxu0 %v940_v9  ;;  %961 = vmatpush.bf16.msra.mxu2 %v940_v9 }
  0x26   :  { %962 = vmatpush.bf16.msra.mxu3 %v940_v9 }
  0x28   :  { %158 = vmatpush.bf16.msra.mxu1 %v915_v10 }
  0x29   :  { %383 = vmatpush.bf16.msra.mxu0 %v939_v11  ;;  %963 = vmatpush.bf16.msra.mxu2 %v939_v11 }
  0x2a   :  { %964 = vmatpush.bf16.msra.mxu3 %v939_v11 }
  0x2c   :  { %159 = vmatpush.bf16.msra.mxu1 %v914_v12 }
  0x2d   :  { %384 = vmatpush.bf16.msra.mxu0 %v938_v13  ;;  %965 = vmatpush.bf16.msra.mxu2 %v938_v13 }
  0x2e   :  { %966 = vmatpush.bf16.msra.mxu3 %v938_v13 }
  0x30   :  { %160 = vmatpush.bf16.msra.mxu1 %v913_v14 }
  0x31   :  { %385 = vmatpush.bf16.msra.mxu0 %v937_v17  ;;  %967 = vmatpush.bf16.msra.mxu2 %v937_v17 }
  0x32   :  { %968 = vmatpush.bf16.msra.mxu3 %v937_v17 }
  0x33   :  { %161 = vmatmul.bf16.vlgmr.msra.gmra.mxu1 %v912_v16 }
  0x34   :  { %235 = vmatpush.bf16.msrb.mxu1 %v928_v15  ;;  %386 = vmatmul.bf16.vlgmr.msra.gmra.mxu0 %v929_v20 }
  0x35   :  { %401 = vmatmul.bf16.vlgmr.msra.gmra.mxu2 %v932_v21  ;;  %416 = vmatmul.bf16.vlgmr.msra.gmra.mxu3 %v935_v22 }
  0x36   :  { %639 = vmatpush.bf16.msrb.mxu3 %v952_v18 }
  0x38   :  { %236 = vmatpush.bf16.msrb.mxu1 %v927_v19 }
  0x3a   :  { %640 = vmatpush.bf16.msrb.mxu3 %v951_v23 }
  0x3c   :  { %237 = vmatpush.bf16.msrb.mxu1 %v926_v24 }
  0x3e   :  { %641 = vmatpush.bf16.msrb.mxu3 %v950_v25 }
  0x40   :  { %238 = vmatpush.bf16.msrb.mxu1 %v925_v26 }
  0x42   :  { %642 = vmatpush.bf16.msrb.mxu3 %v949_v27 }
  0x44   :  { %391 = vmatmul.bf16.gmra.mxu0 %v930_v28  ;;  %239 = vmatpush.bf16.msrb.mxu1 %v924_v31 }
  0x45   :  { %406 = vmatmul.bf16.gmra.mxu2 %v933_v29  ;;  %421 = vmatmul.bf16.gmra.mxu3 %v936_v30 }
  0x46   :  { %643 = vmatpush.bf16.msrb.mxu3 %v948_v32 }
  0x48   :  { %240 = vmatpush.bf16.msrb.mxu1 %v923_v33 }
  0x4a   :  { %644 = vmatpush.bf16.msrb.mxu3 %v947_v35 }
  0x4c   :  { %241 = vmatpush.bf16.msrb.mxu1 %v922_v36 }
  0x4e   :  { %645 = vmatpush.bf16.msrb.mxu3 %v946_v37 }
  0x50   :  { %242 = vmatpush.bf16.msrb.mxu1 %v921_v38 }
  0x52   :  { %646 = vmatpush.bf16.msrb.mxu3 %v945_v39 }
  0x54   :  { %396 = vmatmul.bf16.gmra.mxu0 %v931_v34 }
  0x55   :  { %411 = vmatmul.bf16.gmra.mxu2 %v934_v40 }
  0xb0   :  { %v162_v42 = vpop.f32.mrf.mxu1 }
  0xb1   :  { %v163_v44 = vadd.f32 %v162_v42, %v98_v43  ;;  %v387_v50 = vpop.f32.mrf.mxu0 }
  0xb3   :  { %v167_v47 = vmax.f32 %v163_v44, 0.0 }
  0xb8   :  { %v164_v45 = vpop.f32.mrf.mxu1  ;;  %v1155_v52 = vpop.f32.mrf.mxu2 }
  0xb9   :  { %v165_v46 = vadd.f32 %v164_v45, %v98_v43  ;;  %v389_v51 = vpop.f32.mrf.mxu0  ;;  %v1157_v57 = vpop.f32.mrf.mxu3 }
  0xbb   :  { %v168_v48 = vmax.f32 %v165_v46, 0.0 }
  0xbd   :  { %v169_v49 = vpack.c.bf16 %v168_v48, %v167_v47 }
  0xbf   :  { %243 = vmatmul.bf16.vlgmr.msrb.gmra.mxu1 %v169_v49  ;;  %647 = vmatmul.bf16.vlgmr.msrb.gmra.mxu3 %v169_v49 }
  0xc0   :  { %v404_v54 = vpop.f32.mrf.mxu2 }
  0xc1   :  { %v392_v53 = vpop.f32.mrf.mxu0  ;;  %v1162_v62 = vpop.f32.mrf.mxu3 }
  0xc8   :  { %v407_v56 = vpop.f32.mrf.mxu2 }
  0xc9   :  { %v394_v55 = vpop.f32.mrf.mxu0  ;;  %v422_v29 = vpop.f32.mrf.mxu3 }
  0xd0   :  { %v409_v60 = vpop.f32.mrf.mxu2 }
  0xd1   :  { %v397_v58 = vpop.f32.mrf.mxu0 }
  0xd8   :  { %v412_v26 = vpop.f32.mrf.mxu2 }
  0xd9   :  { %v399_v9 = vpop.f32.mrf.mxu0 }
 0x13c   :  { %v244_v61 = vpop.f32.mrf.mxu1 }
 0x13d   :  { %v443_v63 = vperm.slane %v244_v61, 0  ;;  %v433_v0 = vrot.slane %v244_v61, 5  ;;  %v430_v1 = vrot.slane %v244_v61, 2  ;;  %v429_v2 = vrot.slane %v244_v61, 1 }
 0x13e   :  { %v432_v3 = vrot.slane %v244_v61, 4  ;;  %v431_v11 = vrot.slane %v244_v61, 3  ;;  %v435_v21 = vrot.slane %v244_v61, 7  ;;  %v434_v38 = vrot.slane %v244_v61, 6 }
 0x13f   :  { %v475_v4 = vadd.f32 %v443_v63, %v387_v50  ;;  %v448_v5 = vperm.slane %v433_v0, 0  ;;  %v445_v6 = vperm.slane %v430_v1, 0  ;;  %v444_v7 = vperm.slane %v429_v2, 0  ;;  %v424_v63 = vpop.f32.mrf.mxu3 }
 0x140   :  { %v447_v10 = vperm.slane %v432_v3, 0  ;;  %v446_v25 = vperm.slane %v431_v11, 0  ;;  %v450_v34 = vperm.slane %v435_v21, 0  ;;  %v449_v50 = vperm.slane %v434_v38, 0 }
 0x141   :  { %v492_v12 = vadd.f32 %v1160_v59, %v475_v4  ;;  %v480_v13 = vadd.f32 %v448_v5, %v399_v9  ;;  %v477_v14 = vadd.f32 %v445_v6, %v392_v53  ;;  %v476_v15 = vadd.f32 %v444_v7, %v389_v51 }
 0x142   :  { %v479_v20 = vadd.f32 %v447_v10, %v397_v58  ;;  %v478_v36 = vadd.f32 %v446_v25, %v394_v55  ;;  %v482_v45 = vadd.f32 %v450_v34, %v404_v54  ;;  %v481_v1 = vadd.f32 %v449_v50, %v1155_v52 }
 0x143   :  { %v508_v16 = vmax.f32 %v492_v12, 0.0  ;;  %v497_v17 = vadd.f32 %v1160_v59, %v480_v13  ;;  %v494_v18 = vadd.f32 %v1160_v59, %v477_v14  ;;  %v493_v24 = vadd.f32 %v1160_v59, %v476_v15 }
 0x144   :  { %v1170_v19 = vpop.f32.mrf.mxu1  ;;  %v496_v32 = vadd.f32 %v1160_v59, %v479_v20  ;;  %v495_v48 = vadd.f32 %v1160_v59, %v478_v36  ;;  %v499_v61 = vadd.f32 %v1160_v59, %v482_v45  ;;  %v498_v10 = vadd.f32 %v1160_v59, %v481_v1 }
 0x145   :  { %v525_v22 = vmul.f32 %v1165_v8, %v508_v16  ;;  %v513_v23 = vmax.f32 %v497_v17, 0.0  ;;  %v510_v27 = vmax.f32 %v494_v18, 0.0  ;;  %v451_v28 = vperm.slane %v1170_v19, 0 }
 0x146   :  { %v509_v35 = vmax.f32 %v493_v24, 0.0  ;;  %v436_v37 = vrot.slane %v1170_v19, 1  ;;  %v438_v40 = vrot.slane %v1170_v19, 3  ;;  %v512_v43 = vmax.f32 %v496_v32, 0.0 }
 0x147   :  { %541 = vadd.xlane.f32.xlu0 %v525_v22  ;;  %v530_v30 = vmul.f32 %v1165_v8, %v513_v23  ;;  %v527_v31 = vmul.f32 %v1165_v8, %v510_v27  ;;  %v483_v33 = vadd.f32 %v451_v28, %v407_v56  ;;  %v437_v46 = vrot.slane %v1170_v19, 2  ;;  %v414_v56 = vpop.f32.mrf.mxu2  ;;  %v648_v21 = vpop.f32.mrf.mxu3 }
 0x148   :  { %v452_v42 = vperm.slane %v436_v37, 0  ;;  %v526_v47 = vmul.f32 %v1165_v8, %v509_v35  ;;  %v454_v51 = vperm.slane %v438_v40, 0  ;;  %v529_v58 = vmul.f32 %v1165_v8, %v512_v43 }
 0x149   :  { %551 = vadd.xlane.f32.xlu1 %v530_v30  ;;  %545 = vadd.xlane.f32.xlu2 %v527_v31  ;;  %v500_v39 = vadd.f32 %v1160_v59, %v483_v33  ;;  %v453_v54 = vperm.slane %v437_v46, 0  ;;  %v511_v0 = vmax.f32 %v495_v48, 0.0  ;;  %v441_v4 = vrot.slane %v1170_v19, 6 }
 0x14a   :  { %v484_v49 = vadd.f32 %v452_v42, %v409_v60  ;;  %v439_v60 = vrot.slane %v1170_v19, 4  ;;  %v486_v2 = vadd.f32 %v454_v51, %v414_v56  ;;  %v515_v5 = vmax.f32 %v499_v61, 0.0 }
 0x14b   :  { %v516_v44 = vmax.f32 %v500_v39, 0.0  ;;  %v485_v6 = vadd.f32 %v453_v54, %v412_v26  ;;  %v440_v7 = vrot.slane %v1170_v19, 5  ;;  %v528_v9 = vmul.f32 %v1165_v8, %v511_v0 }
 0x14c   :  { %v501_v55 = vadd.f32 %v1160_v59, %v484_v49  ;;  %v455_v11 = vperm.slane %v439_v60, 0  ;;  %v503_v12 = vadd.f32 %v1160_v59, %v486_v2  ;;  %v457_v13 = vperm.slane %v441_v4, 0 }
 0x14d   :  { %v533_v53 = vmul.f32 %v1165_v8, %v516_v44  ;;  %v532_v14 = vmul.f32 %v1165_v8, %v515_v5  ;;  %v502_v15 = vadd.f32 %v1160_v59, %v485_v6  ;;  %v456_v16 = vperm.slane %v440_v7, 0 }
 0x14e   :  { %v517_v3 = vmax.f32 %v501_v55, 0.0  ;;  %v514_v17 = vmax.f32 %v498_v10, 0.0  ;;  %v487_v18 = vadd.f32 %v455_v11, %v1157_v57  ;;  %v442_v20 = vrot.slane %v1170_v19, 7 }
 0x14f   :  { %543 = vadd.xlane.f32.xlu0 %v526_v47  ;;  %v519_v22 = vmax.f32 %v503_v12, 0.0  ;;  %v489_v23 = vadd.f32 %v457_v13, %v422_v29  ;;  %v518_v24 = vmax.f32 %v502_v15, 0.0  ;;  %v488_v25 = vadd.f32 %v456_v16, %v1162_v62  ;;  %v650_v35 = vpop.f32.mrf.mxu3 }
 0x150   :  { %v534_v52 = vmul.f32 %v1165_v8, %v517_v3  ;;  %v531_v26 = vmul.f32 %v1165_v8, %v514_v17  ;;  %v504_v27 = vadd.f32 %v1160_v59, %v487_v18  ;;  %v458_v28 = vperm.slane %v442_v20, 0 }
 0x151   :  { %557 = vadd.xlane.f32.xlu1 %v533_v53  ;;  %549 = vadd.xlane.f32.xlu2 %v529_v58  ;;  %v536_v30 = vmul.f32 %v1165_v8, %v519_v22  ;;  %v506_v31 = vadd.f32 %v1160_v59, %v489_v23  ;;  %v535_v57 = vmul.f32 %v1165_v8, %v518_v24  ;;  %v590_v62 = vperm.slane %v1152_v41, 2 }
 0x152   :  { %v505_v19 = vadd.f32 %v1160_v59, %v488_v25  ;;  %v520_v32 = vmax.f32 %v504_v27, 0.0  ;;  %v490_v29 = vadd.f32 %v458_v28, %v424_v63  ;;  %v655_v45 = vperm.slane %v1152_v41, 4 }
 0x153   :  { %v522_v33 = vmax.f32 %v506_v31, 0.0  ;;  %v649_v38 = vadd.f32 %v648_v21, %v590_v62  ;;  %v651_v40 = vadd.f32 %v650_v35, %v590_v62  ;;  %v678_v61 = vlaneseq }
 0x154   :  { %v521_v34 = vmax.f32 %v505_v19, 0.0  ;;  %v537_v36 = vmul.f32 %v1165_v8, %v520_v32  ;;  %v507_v37 = vadd.f32 %v1160_v59, %v490_v29  ;;  %v722_v32 = vperm.slane %v1152_v41, 5 }
 0x155   :  { %v539_v39 = vmul.f32 %v1165_v8, %v522_v33  ;;  %v653_v44 = vmax.f32 %v649_v38, 0.0  ;;  %v654_v46 = vmax.f32 %v651_v40, 0.0  ;;  %v679_v0 = vand.u32 127, %v678_v61 }
 0x156   :  { %v538_v42 = vmul.f32 %v1165_v8, %v521_v34  ;;  %v523_v43 = vmax.f32 %v507_v37, 0.0 }
 0x157   :  { %547 = vadd.xlane.f32.xlu0 %v528_v9  ;;  %v656_v48 = vmul.f32 %v655_v45, %v653_v44  ;;  %v657_v49 = vmul.f32 %v655_v45, %v654_v46 }
 0x158   :  { %v540_v47 = vmul.f32 %v1165_v8, %v523_v43 }
 0x159   :  { %559 = vadd.xlane.f32.xlu1 %v534_v52  ;;  %555 = vadd.xlane.f32.xlu2 %v532_v14 }
 0x15f   :  { %553 = vadd.xlane.f32.xlu0 %v531_v26 }
 0x161   :  { %563 = vadd.xlane.f32.xlu1 %v536_v30  ;;  %561 = vadd.xlane.f32.xlu2 %v535_v57 }
 0x167   :  { %565 = vadd.xlane.f32.xlu0 %v537_v36 }
 0x169   :  { %569 = vadd.xlane.f32.xlu1 %v539_v39  ;;  %567 = vadd.xlane.f32.xlu2 %v538_v42 }
 0x16f   :  { %571 = vadd.xlane.f32.xlu0 %v540_v47 }
 0x171   :  { %658 = vadd.xlane.f32.xlu1 %v656_v48  ;;  %660 = vadd.xlane.f32.xlu2 %v657_v49 }
 0x1ba   :  { %v542_v59 = vpop.xlane.xlu0 %541 }
 0x1bb   :  { %v680_v8 = vperm.slane %v542_v59, %v679_v0 }
 0x1bc   :  { %v552_v50 = vpop.xlane.xlu1 %551  ;;  %v546_v51 = vpop.xlane.xlu2 %545 }
 0x1bd   :  { %v682_v9 = vperm.slane %v546_v51, %v679_v0  ;;  %v685_v24 = vperm.slane %v552_v50, %v679_v0 }
 0x1c2   :  { %v544_v53 = vpop.xlane.xlu0 %543 }
 0x1c3   :  { %v681_v1 = vperm.slane %v544_v53, %v679_v0 }
 0x1c4   :  { %v558_v55 = vpop.xlane.xlu1 %557  ;;  %v550_v56 = vpop.xlane.xlu2 %549 }
 0x1c5   :  { %v697_v5 = vsel %vm696_vm0, %v681_v1, %v680_v8  ;;  %v688_v10 = vperm.slane %v558_v55, %v679_v0  ;;  %v684_v16 = vperm.slane %v550_v56, %v679_v0 }
 0x1c6   :  { %v699_v11 = vsel %vm698_vm1, %v682_v9, %v697_v5 }
 0x1ca   :  { %v548_v58 = vpop.xlane.xlu0 %547 }
 0x1cb   :  { %v683_v6 = vperm.slane %v548_v58, %v679_v0 }
 0x1cc   :  { %v560_v54 = vpop.xlane.xlu1 %559  ;;  %v556_v63 = vpop.xlane.xlu2 %555 }
 0x1cd   :  { %v689_v3 = vperm.slane %v560_v54, %v679_v0  ;;  %v701_v13 = vsel %vm700_vm2, %v683_v6, %v699_v11  ;;  %v687_v57 = vperm.slane %v556_v63, %v679_v0 }
 0x1ce   :  { %v703_v20 = vsel %vm702_vm3, %v684_v16, %v701_v13 }
 0x1cf   :  { %v710_v12 = vsel %vm696_vm0, %v689_v3, %v688_v10  ;;  %v705_v27 = vsel %vm704_vm4, %v685_v24, %v703_v20 }
 0x1d2   :  { %v554_v60 = vpop.xlane.xlu0 %553 }
 0x1d3   :  { %v686_v21 = vperm.slane %v554_v60, %v679_v0 }
 0x1d4   :  { %v564_v2 = vpop.xlane.xlu1 %563  ;;  %v562_v4 = vpop.xlane.xlu2 %561 }
 0x1d5   :  { %v690_v7 = vperm.slane %v562_v4, %v679_v0  ;;  %v691_v52 = vperm.slane %v564_v2, %v679_v0  ;;  %v707_v30 = vsel %vm706_vm5, %v686_v21, %v705_v27 }
 0x1d6   :  { %v709_v33 = vsel %vm708_vm6, %v687_v57, %v707_v30 }
 0x1d7   :  { %v711_v14 = vsel %vm698_vm1, %v690_v7, %v710_v12 }
 0x1d8   :  { %v712_v22 = vsel %vm700_vm2, %v691_v52, %v711_v14 }
 0x1da   :  { %v566_v15 = vpop.xlane.xlu0 %565 }
 0x1db   :  { %v692_v17 = vperm.slane %v566_v15, %v679_v0 }
 0x1dc   :  { %v570_v18 = vpop.xlane.xlu1 %569  ;;  %v568_v23 = vpop.xlane.xlu2 %567 }
 0x1dd   :  { %v713_v25 = vsel %vm702_vm3, %v692_v17, %v712_v22  ;;  %v693_v26 = vperm.slane %v568_v23, %v679_v0  ;;  %v694_v28 = vperm.slane %v570_v18, %v679_v0 }
 0x1df   :  { %v714_v31 = vsel %vm704_vm4, %v693_v26, %v713_v25 }
 0x1e0   :  { %v715_v62 = vsel %vm706_vm5, %v694_v28, %v714_v31 }
 0x1e2   :  { %v572_v19 = vpop.xlane.xlu0 %571 }
 0x1e3   :  { %v695_v29 = vperm.slane %v572_v19, %v679_v0 }
 0x1e4   :  { %v659_v34 = vpop.xlane.xlu1 %658  ;;  %v661_v35 = vpop.xlane.xlu2 %660 }
 0x1e5   :  { %v716_v36 = vsel %vm708_vm6, %v695_v29, %v715_v62  ;;  %v720_v37 = vsel %vm719_vm7, %v709_v33, %v659_v34 }
 0x1e6   :  { %v721_v38 = vsel %vm719_vm7, %v716_v36, %v661_v35  ;;  %v723_v39 = vadd.f32 %v722_v32, %v720_v37 }
 0x1e7   :  { %v724_v40 = vadd.f32 %v722_v32, %v721_v38 }
 0x1e8   :  { %725 = vst [vmem:[#allocation10] sm:$0xff] %v723_v39 }
 0x1e9   :  { %726 = vst [vmem:[#allocation10 + $0x8] sm:$0xff] %v724_v40 }
 0x1ea   :  { %739 = dma.vmem_to_hbm [thread:$0]  %s732_s3, 256, %s734_s11, [#allocation4], %s1113_s12, %s1113_s12, %s1114_s13  }
 0x1eb   :  { %1104 = dma.done.wait [#allocation4], 256  }
 0x1ec   :  { %1105 = vsyncadd [#allocation4], 4294967040 }
 0x1ed   :  { %744 = vsyncpa [#allocation3], 1 }
 0x1ee   :  { %745 = vsyncpa [#allocation6], 1 }
 0x1ef   :  { %746 = vsyncpa [#allocation9], 1 }
 0x1f0   :  { %747 = vsyncpa [#allocation4], 1 }

</bundles_post_ra>
